<compile_context>
chip_gen: v7x
topology: tpu7x:2x2x1
jax: 0.10.0
libtpu: 0.0.40
codegen_flags: <defaults>
</compile_context>

<pallas_src>
import functools

import jax
import jax.numpy as jnp
from jax.experimental import pallas as pl
from jax.experimental.pallas import tpu as pltpu


def _round_up(a, b):
    return (a + b - 1) // b * b


def _cdiv(a, b):
    return (a + b - 1) // b


def _choose_tile_rows(m, batch, itemsize, k, e):
    """Patch rows per grid step: ~2 MB of HBM per step, 128-lane aligned."""
    if m <= 128:
        return m                                     # one block == full dim
    row_bytes = (k + e) * itemsize                   # LHS + output bytes / row
    target = min(4096, max(512, (2 << 20) // max(row_bytes, 1)))
    if batch == 1:                                   # keep grid splittable (v7x)
        target = min(target, _cdiv(m, 2))
    steps = _cdiv(m, target)
    tm = _cdiv(m, steps)                             # near-divisor -> tiny overhang
    return _round_up(tm, 128)                        # lane-dense transposed stores


def _patch_embed_kernel(x_ref, w_ref, b_ref, o_ref):
    # x_ref: (1, tm, K)      patch vectors for one image tile (input dtype)
    # w_ref: (K, E_pad)      flattened conv weight, transposed + lane-padded
    # b_ref: (1, E_pad)      bias, already f32 and lane-padded
    # o_ref: (1, E, tm)      channels-major output tile
    e = o_ref.shape[1]
    acc = jnp.dot(x_ref[0], w_ref[...], preferred_element_type=jnp.float32)
    acc = acc + b_ref[...]
    # Transpose the tile on the XLU (idle in this kernel) so the output leaves
    # the kernel already channels-major; padded E columns are dropped here.
    o_ref[0] = acc.T[:e].astype(o_ref.dtype)


@functools.partial(jax.jit, static_argnames=("patch_size",))
def patch_embed_forward(x, weight, bias, patch_size=(4, 4)):
    """Pallas implementation of PatchEmbed.forward.

    x:      (B, C, H, W)   NCHW, like the PyTorch module
    weight: (E, C, ph, pw) nn.Conv2d weight layout
    bias:   (E,)
    returns (B, E, Wh, Ww)
    """
    B, C, H, W = x.shape
    ph, pw = patch_size
    E = weight.shape[0]

    # Same right/bottom zero-padding as F.pad in the PyTorch forward.
    pad_h = (-H) % ph
    pad_w = (-W) % pw
    if pad_h or pad_w:
        x = jnp.pad(x, ((0, 0), (0, 0), (0, pad_h), (0, pad_w)))
    Hp, Wp = H + pad_h, W + pad_w
    Wh, Ww = Hp // ph, Wp // pw

    K = C * ph * pw
    Mq = Wh * Ww

    # Non-overlapping patches, flattened in (c, kh, kw) order to match Conv2d's
    # weight flattening; kept per-batch so the kernel can write (B, E, Wh*Ww).
    patches = (
        x.reshape(B, C, Wh, ph, Ww, pw)
        .transpose(0, 2, 4, 1, 3, 5)               # (B, Wh, Ww, C, ph, pw)
        .reshape(B, Mq, K)
    )

    # Lane-pad E for a clean (tm, 128k) matmul/transpose tile; the padded
    # columns never reach HBM (they are sliced off inside the kernel).
    E_pad = _round_up(E, 128)
    w2 = weight.reshape(E, K).T.astype(x.dtype)    # (K, E)
    if E_pad != E:
        w2 = jnp.pad(w2, ((0, 0), (0, E_pad - E)))
    b2 = jnp.pad(bias.astype(jnp.float32).reshape(1, E),
                 ((0, 0), (0, E_pad - E)))         # (1, E_pad), f32

    itemsize = jnp.dtype(x.dtype).itemsize
    tm = _choose_tile_rows(Mq, B, itemsize, K, E)
    steps = _cdiv(Mq, tm)                          # ragged last block, no pad

    out = pl.pallas_call(
        _patch_embed_kernel,
        out_shape=jax.ShapeDtypeStruct((B, E, Mq), x.dtype),
        grid=(B, steps),
        in_specs=[
            pl.BlockSpec((1, tm, K), lambda b, i: (b, i, 0)),
            pl.BlockSpec((K, E_pad), lambda b, i: (0, 0)),   # VMEM-resident weight
            pl.BlockSpec((1, E_pad), lambda b, i: (0, 0)),   # VMEM-resident bias
        ],
        out_specs=pl.BlockSpec((1, E, tm), lambda b, i: (b, 0, i)),
        compiler_params=pltpu.CompilerParams(
            dimension_semantics=("parallel", "parallel"),
            # Let XLA fuse the patch-extraction producer into the pallas input
            # instead of materializing `patches` separately in HBM.
            allow_input_fusion=[True, False, False],
        ),
    )(patches, w2, b2)

    # Channels-major already; final NCHW reshape is free.
    return out.reshape(B, E, Wh, Ww)


def _reference_conv(x, weight, bias, patch_size):
    # Plain-JAX reference: Conv2d with kernel=stride=patch_size (NCHW/OIHW).
    ph, pw = patch_size
    H, W = x.shape[2], x.shape[3]
    pad_h = (-H) % ph
    pad_w = (-W) % pw
    if pad_h or pad_w:
        x = jnp.pad(x, ((0, 0), (0, 0), (0, pad_h), (0, pad_w)))
    y = jax.lax.conv_general_dilated(
        x, weight, window_strides=(ph, pw), padding="VALID",
        dimension_numbers=("NCHW", "OIHW", "NCHW"),
    )
    return y + bias.reshape(1, -1, 1, 1)


def _run_case(B, C, H, W, embed_dim, patch_size, seed):
    key = jax.random.PRNGKey(seed)
    kx, kw, kb = jax.random.split(key, 3)
    x = jax.random.normal(kx, (B, C, H, W), dtype=jnp.float32)
    fan_in = C * patch_size[0] * patch_size[1]
    weight = jax.random.normal(
        kw, (embed_dim, C, patch_size[0], patch_size[1]), dtype=jnp.float32
    ) * (1.0 / jnp.sqrt(fan_in))
    bias = jax.random.normal(kb, (embed_dim,), dtype=jnp.float32) * 0.02

    out = jax.block_until_ready(
        patch_embed_forward(x, weight, bias, patch_size=patch_size))
    ref = _reference_conv(x, weight, bias, patch_size)

    Wh = -(-H // patch_size[0])
    Ww = -(-W // patch_size[1])
    assert out.shape == (B, embed_dim, Wh, Ww), (out.shape, (B, embed_dim, Wh, Ww))
    assert jnp.allclose(out, ref, atol=5e-4, rtol=5e-4)


if __name__ == "__main__":
    # Small deterministic case (spec-sized): exact-fit blocks, E < 128.
    _run_case(B=2, C=4, H=16, W=16, embed_dim=32, patch_size=(4, 4), seed=0)
    # Swin-flavored case: exercises spatial padding (57 -> 60), the ragged
    # 128-aligned M tile (225 patches/img -> tm=256 overhang), and the E=96
    # in-kernel slice of the lane-padded tile.
    _run_case(B=2, C=3, H=57, W=57, embed_dim=96, patch_size=(4, 4), seed=1)

    print("KERNEL_OK")
</pallas_src>

<mosaic_0001>
module attributes {stable_mosaic.version = 11 : i64} {
  func.func @_patch_embed_kernel(%arg0: i32, %arg1: i32, %arg2: memref<1x16x64xf32, #tpu.memory_space<vmem>>, %arg3: memref<64x128xf32, #tpu.memory_space<vmem>>, %arg4: memref<1x128xf32, #tpu.memory_space<vmem>>, %arg5: memref<1x32x16xf32, #tpu.memory_space<vmem>>) attributes {dimension_semantics = [#tpu.dimension_semantics<parallel>, #tpu.dimension_semantics<parallel>], iteration_bounds = array<i64: 2, 1>, scalar_prefetch = 0 : i64, scratch_operands = 0 : i64, tpu.core_type = #tpu.core_type<tc>, window_params = [{transform_indices = @transform_0, window_bounds = array<i64: 1, 16, 64>}, {pipeline_mode = #tpu.pipeline_mode<synchronous>, transform_indices = @transform_1, window_bounds = array<i64: 64, 128>}, {pipeline_mode = #tpu.pipeline_mode<synchronous>, transform_indices = @transform_2, window_bounds = array<i64: 1, 128>}, {transform_indices = @transform_3, window_bounds = array<i64: 1, 32, 16>}]} {
    %c0 = arith.constant 0 : index
    %c0_0 = arith.constant 0 : index
    %c0_1 = arith.constant 0 : index
    %0 = vector.load %arg2[%c0, %c0_0, %c0_1] : memref<1x16x64xf32, #tpu.memory_space<vmem>>, vector<1x16x64xf32>
    %1 = vector.shape_cast %0 : vector<1x16x64xf32> to vector<16x64xf32>
    %c0_2 = arith.constant 0 : index
    %c0_3 = arith.constant 0 : index
    %2 = vector.load %arg3[%c0_2, %c0_3] : memref<64x128xf32, #tpu.memory_space<vmem>>, vector<64x128xf32>
    %cst = arith.constant dense<0.000000e+00> : vector<16x128xf32>
    %3 = tpu.matmul %1, %2, %cst {dimension_numbers = #tpu.dot_dimension_numbers<[1], [0], [0], [1], [0, 0, 1, 1], [], []>} : vector<16x64xf32>, vector<64x128xf32>, vector<16x128xf32> -> vector<16x128xf32>
    %c0_4 = arith.constant 0 : index
    %c0_5 = arith.constant 0 : index
    %4 = vector.load %arg4[%c0_4, %c0_5] : memref<1x128xf32, #tpu.memory_space<vmem>>, vector<1x128xf32>
    %5 = vector.broadcast %4 : vector<1x128xf32> to vector<16x128xf32>
    %6 = arith.addf %3, %5 : vector<16x128xf32>
    %7 = tpu.transpose %6, [1, 0] : vector<16x128xf32> -> vector<128x16xf32>
    %8 = vector.extract_strided_slice %7 {offsets = [0, 0], sizes = [32, 16], strides = [1, 1]} : vector<128x16xf32> to vector<32x16xf32>
    %c0_6 = arith.constant 0 : index
    %c0_7 = arith.constant 0 : index
    %c0_8 = arith.constant 0 : index
    %9 = vector.load %arg5[%c0_6, %c0_7, %c0_8] : memref<1x32x16xf32, #tpu.memory_space<vmem>>, vector<1x32x16xf32>
    %10 = vector.shape_cast %9 : vector<1x32x16xf32> to vector<32x16xf32>
    %11 = vector.shape_cast %8 : vector<32x16xf32> to vector<1x32x16xf32>
    tpu.vector_store %arg5[%c0_6, %c0_7, %c0_8], %11 {strides = array<i32>} : memref<1x32x16xf32, #tpu.memory_space<vmem>>, vector<1x32x16xf32>,
    return
  }
  func.func @transform_0(%arg0: i32, %arg1: i32) -> (i32, i32, i32) {
    %c0_i32 = arith.constant 0 : i32
    %c0_i32_0 = arith.constant 0 : i32
    return %arg0, %arg1, %c0_i32 : i32, i32, i32
  }
  func.func @transform_1(%arg0: i32, %arg1: i32) -> (i32, i32) {
    %c0_i32 = arith.constant 0 : i32
    %c0_i32_0 = arith.constant 0 : i32
    %c0_i32_1 = arith.constant 0 : i32
    return %c0_i32, %c0_i32_0 : i32, i32
  }
  func.func @transform_2(%arg0: i32, %arg1: i32) -> (i32, i32) {
    %c0_i32 = arith.constant 0 : i32
    %c0_i32_0 = arith.constant 0 : i32
    %c0_i32_1 = arith.constant 0 : i32
    return %c0_i32, %c0_i32_0 : i32, i32
  }
  func.func @transform_3(%arg0: i32, %arg1: i32) -> (i32, i32, i32) {
    %c0_i32 = arith.constant 0 : i32
    %c0_i32_0 = arith.constant 0 : i32
    return %arg0, %c0_i32, %arg1 : i32, i32, i32
  }
}

</mosaic_0001>

<bundles_post_ra>
// kernel: patch_embed_forward.1
= control target key start
LH: loop header
LB: loop body
LE: loop exit
PB: predicated region body
PF: predicated region fallthrough
CT: control target
= control target key end

     0   :  { %s556_s12 = smov 0   ;;  %s558_s13 = smov 0   ;;  %s620_s0 = inlined_call_operand.vmem [shape: f32[2,16,64], index: 0, kind: input, shape index: {}]   ;;  %s621_s1 = inlined_call_operand.vmem [shape: f32[64,128], index: 1, kind: input, shape index: {}]   ;;  %s622_s2 = inlined_call_operand.vmem [shape: f32[1,128], index: 2, kind: input, shape index: {}]   ;;  %s623_s3 = inlined_call_operand.vmem [shape: f32[2,32,16], index: 3, kind: output, shape index: {}]  }
   0x1   :  { %s560_s14 = smov 0  }
   0x2 LB: > { %s25_s15 = sadd.s32 1, %s530_s13  ;;  %p430_p0 = scmp.ge.s32.totalorder %s534_s14, 1  ;;  %s534_s14 = sphi %s560_s14, %s13_s14   ;;  %s530_s13 = sphi %s558_s13, %s625_s13   ;;  %s526_s12 = sphi %s556_s12, %s624_s12  }
   0x3   : > { %p27_p1 = scmp.ge.s32.totalorder %s25_s15, 2  ;;  %p158_p2 = scmp.lt.s32.totalorder %s534_s14, 3 }
   0x5   : > { %s627_s15 = smov (%p27_p1, %s25_s15), 0  ;;  %p159_p3 = pnand %p430_p0, %p158_p2 }
   0x6   : > { %v209_v0 = vld [vmem:[%s621_s1] sm:$0xff] (!%p159_p3)  ;;  %v210_v1 = vld [vmem:[%s621_s1 + $0x8] sm:$0xff] (!%p159_p3)  ;;  %v211_v2 = vld [vmem:[%s621_s1 + $0x10] sm:$0xff] (!%p159_p3)  ;;  %p190_p4 = scmp.lt.s32.totalorder (!%p159_p3), %s526_s12, 1  ;;  %vm224_vm0 = vcmask (!%p159_p3), 523264   ;;  %vm338_vm1 = vcmask (!%p159_p3), 130048  }
   0x7   : > { %162 = sbr.rel (%p159_p3) target bundleno = 382 (0x17e), region = 32  ;;  %v471_v3 = vpack.c.bf16 (!%p159_p3), %v210_v1, %v209_v0  ;;  %v212_v4 = vld [vmem:[%s621_s1 + $0x18] sm:$0xff] (!%p159_p3)  ;;  %v213_v6 = vld [vmem:[%s621_s1 + $0x20] sm:$0xff] (!%p159_p3)  ;;  %v214_v7 = vld [vmem:[%s621_s1 + $0x28] sm:$0xff] (!%p159_p3) }
   0x8   : > { %v475_v5 = vpack.c.bf16 (!%p159_p3), %v212_v4, %v211_v2  ;;  %v479_v8 = vpack.c.bf16 (!%p159_p3), %v214_v7, %v213_v6  ;;  %v215_v9 = vld [vmem:[%s621_s1 + $0x30] sm:$0xff] (!%p159_p3)  ;;  %v216_v10 = vld [vmem:[%s621_s1 + $0x38] sm:$0xff] (!%p159_p3)  ;;  %v435_v14 = vld [vmem:[%s622_s2] ss:$0 sm:$0xff] (!%p159_p3) }
   0x9   : > { %472 = vmatprep.subr.bf16.mxu0 (!%p159_p3), %v471_v3  ;;  %v483_v12 = vpack.c.bf16 (!%p159_p3), %v216_v10, %v215_v9 }
   0xa   : > { %474 = vmatpush3.bf16.msra.mxu0 (!%p159_p3), %v471_v3 }
   0xb   : > { %476 = vmatprep.subr.bf16.mxu0 (!%p159_p3), %v475_v5 }
   0xe   : > { %s629_s12 = smov (!%p190_p4, %s526_s12), 1  ;;  %478 = vmatpush3.bf16.msra.mxu0 %v475_v5 }
   0xf   : > { %s440_s28 = sshll.u32 %s629_s12, 4  ;;  %480 = vmatprep.subr.bf16.mxu0 %v479_v8  ;;  %s441_s11 = sshll.u32 %s629_s12, 5 }
  0x10   : > { %s197_s4 = scalar_lea.vmem %s620_s0, %s440_s28  ;;  %s206_s18 = scalar_lea.vmem %s623_s3, %s441_s11 }
  0x11   : > { %v207_v11 = vld [vmem:[%s197_s4] sm:$0xff]  ;;  %v208_v13 = vld [vmem:[%s197_s4 + $0x8] sm:$0xff] }
  0x12   : > { %468 = vmatprep.mubr.msk.f32.mxu0 %vm224_vm0, %v207_v11  ;;  %482 = vmatpush3.bf16.msra.mxu0 %v479_v8 }
  0x13   : > { %484 = vmatprep.subr.bf16.mxu0 %v483_v12 }
  0x16   : > { %486 = vmatpush3.bf16.msra.mxu0 %v483_v12 }
  0x19   : > { %469 = vmatmul.mubr.msk.f32.vlgmr.msra.gmra.mrb[0].mxu0 %vm224_vm0, %v208_v13 }
  0xec   : > { %v470_v15 = vpop.f32.mrb[0].mxu0 }
  0xed   : > { %v297_v16 = vpop.f32.mrb[1].mxu0  ;;  %v303_v18 = vadd.f32 %v470_v15, %v435_v14 }
  0xee   : > { %v298_v17 = vadd.f32 %v435_v14, %v297_v16 }
  0xf0   : > { %306 = vxpose.xlu0.b32.start [1/2] (short) (narrow) %v298_v17, 32 }
  0xf4   : > { %307 = vxpose.xlu0.b32.end [2/2] (short) (narrow) %v303_v18, 32 }
 0x170   : > { %v322_v19 = vpop.trf.xlu0 }
 0x171   : > { %339 = vst.msk [vmem:[%s206_s18] sm:$0xff] %vm338_vm1, %v322_v19 }
 0x174   : > { %v323_v20 = vpop.trf.xlu0 }
 0x175   : > { %340 = vst.msk [vmem:[%s206_s18 + $0x8] sm:$0xff] %vm338_vm1, %v323_v20 }
 0x178   : > { %v324_v21 = vpop.trf.xlu0 }
 0x179   : > { %341 = vst.msk [vmem:[%s206_s18 + $0x10] sm:$0xff] %vm338_vm1, %v324_v21 }
 0x17c   : > { %v325_v22 = vpop.trf.xlu0 }
 0x17d   : > { %342 = vst.msk [vmem:[%s206_s18 + $0x18] sm:$0xff] %vm338_vm1, %v325_v22 }
 0x17e PF: > { %s13_s14 = sadd.s32 1, %s534_s14   ;;  %s624_s12 = smov %s530_s13 }
 0x17f   : > { %p10_p5 = scmp.ge.s32.totalorder %s13_s14, 4   ;;  %s625_s13 = smov %s627_s15 }
 0x181   :  { %12 = sbr.rel (!%p10_p5) target bundleno = 2 (0x2), region = 62 }

</bundles_post_ra>
